<compile_context>
chip_gen: v7x
topology: tpu7x:2x2x1
jax: 0.10.0
libtpu: 0.0.40
codegen_flags: <defaults>
</compile_context>

<pallas_src>
import math
import numpy as np
import jax
import jax.numpy as jnp
from jax.experimental import pallas as pl
from jax.experimental.pallas import tpu as pltpu

# ---------------- SITH hyper-parameters (small, consistent with module) ------
TAU_0 = 0.1
K = 4
C = 0.1
NTAU = 32                    # module default is 100; kept small for the demo
IN_FEATURES = 32
SEQ = 8
ALPHA = 1.0
DUR = 1.0 / 30.0             # frame presentation duration
DT = 1.0 / 300.0             # integration step
DELAY = DUR - DT             # inter-frame decay-only period
N_SUB = int(round(DUR / DT)) # 10 Euler sub-steps per frame
N_S = NTAU + 2 * K           # tau* buffer of k on each side (trimmed after D^k)


def _build_sith_operators():
    """Host-side (float64) precompute of all SITH operators."""
    idx = np.arange(-K, NTAU + K, dtype=np.float64)
    tau_star = TAU_0 * (1.0 + C) ** idx            # (N_S,) geometric tau* grid
    s = K / tau_star                               # (N_S,) Laplace rates

    # 3-point first-derivative matrix w.r.t. the non-uniform s grid.
    D = np.zeros((N_S, N_S), dtype=np.float64)
    for i in range(1, N_S - 1):
        x0, x1, x2 = s[i - 1], s[i], s[i + 1]
        D[i, i - 1] = (x1 - x2) / ((x0 - x1) * (x0 - x2))
        D[i, i] = (2.0 * x1 - x0 - x2) / ((x1 - x0) * (x1 - x2))
        D[i, i + 1] = (x1 - x0) / ((x2 - x0) * (x2 - x1))
    Dk_trim = np.linalg.matrix_power(D, K)[K:-K, :]                       # (NTAU, N_S)
    post_trim = (((-1.0) ** K) * s ** (K + 1) / math.factorial(K))[K:-K]  # (NTAU,)

    # Closed-form per-frame update (exact for the linear Euler recurrence):
    #   sub-step:  t <- r*t + DT*ALPHA*item,   r = 1 - DT*ALPHA*s
    #   N_SUB sub-steps, then delay decay, with the item = x*DT pre-scale
    #   folded in:  t_new = A*t + B*x
    decay_delay = np.exp(-s * ALPHA * DELAY)       # (N_S,) inter-frame decay
    r = 1.0 - DT * ALPHA * s
    geom = (1.0 - r ** N_SUB) / (DT * ALPHA * s)   # sum_{i<N_SUB} r^i
    a_coef = decay_delay * r ** N_SUB
    b_coef = decay_delay * (DT * ALPHA) * geom * DT
    return a_coef, b_coef, Dk_trim, post_trim, s, decay_delay


# ------------------------------- Pallas kernel -------------------------------
def _make_sith_kernel(seq, feat):
    def kernel(x_ref, a_ref, b_ref, dk_ref, post_ref, out_ref, states_ref):
        # x_ref:      (seq, 1, feat)   per-frame inputs
        # a_ref/b_ref:(N_S, feat)      closed-form per-frame update coefficients
        # dk_ref:     (NTAU, N_S)      trimmed D^k operator (near unit scale)
        # post_ref:   (NTAU, 1)        Post scale, applied after the matmul
        # out_ref:    (NTAU, seq*feat) lane-dense output slab
        # states_ref: (N_S, seq*feat)  VMEM slab of per-frame Laplace states
        a = a_ref[...]
        b = b_ref[...]
        t = jnp.zeros((N_S, feat), dtype=jnp.float32)
        for i in range(seq):                       # static unroll (seq is small)
            t = a * t + b * x_ref[i]               # x_ref[i] -> (1, feat)
            states_ref[:, i * feat:(i + 1) * feat] = t
        # Single batched MXU pass over all frames, then the Post row scale.
        m = jnp.dot(dk_ref[...], states_ref[...],
                    preferred_element_type=jnp.float32)
        out_ref[...] = m * post_ref[...]
    return kernel


def sith_forward(x):
    """x: (seq, in_features) float32 -> (seq, ntau, in_features) float32."""
    seq, feat = x.shape
    a_np, b_np, dk_np, post_np, _, _ = _build_sith_operators()

    # Pre-broadcast per-s coefficients to (N_S, feat) on the host (tiny, ~5 KB).
    a2 = jnp.asarray(np.broadcast_to(a_np[:, None], (N_S, feat)),
                     dtype=jnp.float32)
    b2 = jnp.asarray(np.broadcast_to(b_np[:, None], (N_S, feat)),
                     dtype=jnp.float32)
    dk = jnp.asarray(dk_np, dtype=jnp.float32)                    # (NTAU, N_S)
    post = jnp.asarray(post_np.reshape(NTAU, 1), dtype=jnp.float32)
    x3 = x.astype(jnp.float32).reshape(seq, 1, feat)

    out_slab = pl.pallas_call(
        _make_sith_kernel(seq, feat),
        out_shape=jax.ShapeDtypeStruct((NTAU, seq * feat), jnp.float32),
        scratch_shapes=[pltpu.VMEM((N_S, seq * feat), jnp.float32)],
    )(x3, a2, b2, dk, post)

    # Lane-dense (NTAU, seq*feat) slab -> (seq, ntau, feat) in the wrapper.
    return out_slab.reshape(NTAU, seq, feat).transpose(1, 0, 2)


# --------------------------- pure-numpy reference ----------------------------
def sith_reference(x_np):
    """Explicit Euler sub-stepping reference (independent of the closed form)."""
    _, _, dk_np, post_np, s_np, decay_np = _build_sith_operators()
    s = s_np[:, None]
    decay = decay_np[:, None]
    wk = post_np[:, None] * dk_np                  # fused (NTAU, N_S) operator
    t = np.zeros((N_S, x_np.shape[1]), dtype=np.float64)
    outs = []
    for i in range(x_np.shape[0]):
        item = x_np[i].astype(np.float64)[None, :] * DT
        for _ in range(N_SUB):
            t = t + (DT * ALPHA) * (item - s * t)
        t = t * decay
        outs.append(wk @ t)
    return np.stack(outs, 0)


if __name__ == "__main__":
    key = jax.random.PRNGKey(0)
    x = jax.random.normal(key, (SEQ, IN_FEATURES), dtype=jnp.float32)

    out = sith_forward(x)
    out = jax.block_until_ready(out)

    ref = sith_reference(np.asarray(x))
    rel_err = np.max(np.abs(np.asarray(out, dtype=np.float64) - ref)) / (
        np.max(np.abs(ref)) + 1e-12)
    assert out.shape == (SEQ, NTAU, IN_FEATURES), out.shape
    assert rel_err < 2e-2, f"mismatch vs reference: rel_err={rel_err}"
    print("KERNEL_OK")
</pallas_src>

<mosaic_0001>
module attributes {stable_mosaic.version = 11 : i64} {
  func.func @kernel(%arg0: memref<8x1x32xf32, #tpu.memory_space<vmem>>, %arg1: memref<40x32xf32, #tpu.memory_space<vmem>>, %arg2: memref<40x32xf32, #tpu.memory_space<vmem>>, %arg3: memref<32x40xf32, #tpu.memory_space<vmem>>, %arg4: memref<32x1xf32, #tpu.memory_space<vmem>>, %arg5: memref<32x256xf32, #tpu.memory_space<vmem>>, %arg6: memref<40x256xf32, #tpu.memory_space<vmem>>) attributes {dimension_semantics = [], scalar_prefetch = 0 : i64, scratch_operands = 1 : i64, tpu.core_type = #tpu.core_type<tc>} {
    %c0 = arith.constant 0 : index
    %c0_0 = arith.constant 0 : index
    %0 = vector.load %arg1[%c0, %c0_0] : memref<40x32xf32, #tpu.memory_space<vmem>>, vector<40x32xf32>
    %c0_1 = arith.constant 0 : index
    %c0_2 = arith.constant 0 : index
    %1 = vector.load %arg2[%c0_1, %c0_2] : memref<40x32xf32, #tpu.memory_space<vmem>>, vector<40x32xf32>
    %cst = arith.constant 0.000000e+00 : f32
    %2 = vector.broadcast %cst : f32 to vector<40x32xf32>
    %3 = arith.mulf %0, %2 : vector<40x32xf32>
    %c0_3 = arith.constant 0 : index
    %c0_4 = arith.constant 0 : index
    %c0_5 = arith.constant 0 : index
    %4 = vector.load %arg0[%c0_3, %c0_4, %c0_5] : memref<8x1x32xf32, #tpu.memory_space<vmem>>, vector<1x1x32xf32>
    %5 = vector.shape_cast %4 : vector<1x1x32xf32> to vector<1x32xf32>
    %6 = vector.broadcast %5 : vector<1x32xf32> to vector<40x32xf32>
    %7 = arith.mulf %1, %6 : vector<40x32xf32>
    %8 = arith.addf %3, %7 : vector<40x32xf32>
    %c0_6 = arith.constant 0 : index
    %c0_7 = arith.constant 0 : index
    %9 = vector.load %arg6[%c0_6, %c0_7] : memref<40x256xf32, #tpu.memory_space<vmem>>, vector<40x32xf32>
    tpu.vector_store %arg6[%c0_6, %c0_7], %8 {strides = array<i32>} : memref<40x256xf32, #tpu.memory_space<vmem>>, vector<40x32xf32>,
    %10 = arith.mulf %0, %8 : vector<40x32xf32>
    %c1 = arith.constant 1 : index
    %c0_8 = arith.constant 0 : index
    %c0_9 = arith.constant 0 : index
    %11 = vector.load %arg0[%c1, %c0_8, %c0_9] : memref<8x1x32xf32, #tpu.memory_space<vmem>>, vector<1x1x32xf32>
    %12 = vector.shape_cast %11 : vector<1x1x32xf32> to vector<1x32xf32>
    %13 = vector.broadcast %12 : vector<1x32xf32> to vector<40x32xf32>
    %14 = arith.mulf %1, %13 : vector<40x32xf32>
    %15 = arith.addf %10, %14 : vector<40x32xf32>
    %c0_10 = arith.constant 0 : index
    %c32 = arith.constant 32 : index
    %16 = vector.load %arg6[%c0_10, %c32] : memref<40x256xf32, #tpu.memory_space<vmem>>, vector<40x32xf32>
    tpu.vector_store %arg6[%c0_10, %c32], %15 {strides = array<i32>} : memref<40x256xf32, #tpu.memory_space<vmem>>, vector<40x32xf32>,
    %17 = arith.mulf %0, %15 : vector<40x32xf32>
    %c2 = arith.constant 2 : index
    %c0_11 = arith.constant 0 : index
    %c0_12 = arith.constant 0 : index
    %18 = vector.load %arg0[%c2, %c0_11, %c0_12] : memref<8x1x32xf32, #tpu.memory_space<vmem>>, vector<1x1x32xf32>
    %19 = vector.shape_cast %18 : vector<1x1x32xf32> to vector<1x32xf32>
    %20 = vector.broadcast %19 : vector<1x32xf32> to vector<40x32xf32>
    %21 = arith.mulf %1, %20 : vector<40x32xf32>
    %22 = arith.addf %17, %21 : vector<40x32xf32>
    %c0_13 = arith.constant 0 : index
    %c64 = arith.constant 64 : index
    %23 = vector.load %arg6[%c0_13, %c64] : memref<40x256xf32, #tpu.memory_space<vmem>>, vector<40x32xf32>
    tpu.vector_store %arg6[%c0_13, %c64], %22 {strides = array<i32>} : memref<40x256xf32, #tpu.memory_space<vmem>>, vector<40x32xf32>,
    %24 = arith.mulf %0, %22 : vector<40x32xf32>
    %c3 = arith.constant 3 : index
    %c0_14 = arith.constant 0 : index
    %c0_15 = arith.constant 0 : index
    %25 = vector.load %arg0[%c3, %c0_14, %c0_15] : memref<8x1x32xf32, #tpu.memory_space<vmem>>, vector<1x1x32xf32>
    %26 = vector.shape_cast %25 : vector<1x1x32xf32> to vector<1x32xf32>
    %27 = vector.broadcast %26 : vector<1x32xf32> to vector<40x32xf32>
    %28 = arith.mulf %1, %27 : vector<40x32xf32>
    %29 = arith.addf %24, %28 : vector<40x32xf32>
    %c0_16 = arith.constant 0 : index
    %c96 = arith.constant 96 : index
    %30 = vector.load %arg6[%c0_16, %c96] : memref<40x256xf32, #tpu.memory_space<vmem>>, vector<40x32xf32>
    tpu.vector_store %arg6[%c0_16, %c96], %29 {strides = array<i32>} : memref<40x256xf32, #tpu.memory_space<vmem>>, vector<40x32xf32>,
    %31 = arith.mulf %0, %29 : vector<40x32xf32>
    %c4 = arith.constant 4 : index
    %c0_17 = arith.constant 0 : index
    %c0_18 = arith.constant 0 : index
    %32 = vector.load %arg0[%c4, %c0_17, %c0_18] : memref<8x1x32xf32, #tpu.memory_space<vmem>>, vector<1x1x32xf32>
    %33 = vector.shape_cast %32 : vector<1x1x32xf32> to vector<1x32xf32>
    %34 = vector.broadcast %33 : vector<1x32xf32> to vector<40x32xf32>
    %35 = arith.mulf %1, %34 : vector<40x32xf32>
    %36 = arith.addf %31, %35 : vector<40x32xf32>
    %c0_19 = arith.constant 0 : index
    %c128 = arith.constant 128 : index
    %37 = vector.load %arg6[%c0_19, %c128] : memref<40x256xf32, #tpu.memory_space<vmem>>, vector<40x32xf32>
    tpu.vector_store %arg6[%c0_19, %c128], %36 {strides = array<i32>} : memref<40x256xf32, #tpu.memory_space<vmem>>, vector<40x32xf32>,
    %38 = arith.mulf %0, %36 : vector<40x32xf32>
    %c5 = arith.constant 5 : index
    %c0_20 = arith.constant 0 : index
    %c0_21 = arith.constant 0 : index
    %39 = vector.load %arg0[%c5, %c0_20, %c0_21] : memref<8x1x32xf32, #tpu.memory_space<vmem>>, vector<1x1x32xf32>
    %40 = vector.shape_cast %39 : vector<1x1x32xf32> to vector<1x32xf32>
    %41 = vector.broadcast %40 : vector<1x32xf32> to vector<40x32xf32>
    %42 = arith.mulf %1, %41 : vector<40x32xf32>
    %43 = arith.addf %38, %42 : vector<40x32xf32>
    %c0_22 = arith.constant 0 : index
    %c160 = arith.constant 160 : index
    %44 = vector.load %arg6[%c0_22, %c160] : memref<40x256xf32, #tpu.memory_space<vmem>>, vector<40x32xf32>
    tpu.vector_store %arg6[%c0_22, %c160], %43 {strides = array<i32>} : memref<40x256xf32, #tpu.memory_space<vmem>>, vector<40x32xf32>,
    %45 = arith.mulf %0, %43 : vector<40x32xf32>
    %c6 = arith.constant 6 : index
    %c0_23 = arith.constant 0 : index
    %c0_24 = arith.constant 0 : index
    %46 = vector.load %arg0[%c6, %c0_23, %c0_24] : memref<8x1x32xf32, #tpu.memory_space<vmem>>, vector<1x1x32xf32>
    %47 = vector.shape_cast %46 : vector<1x1x32xf32> to vector<1x32xf32>
    %48 = vector.broadcast %47 : vector<1x32xf32> to vector<40x32xf32>
    %49 = arith.mulf %1, %48 : vector<40x32xf32>
    %50 = arith.addf %45, %49 : vector<40x32xf32>
    %c0_25 = arith.constant 0 : index
    %c192 = arith.constant 192 : index
    %51 = vector.load %arg6[%c0_25, %c192] : memref<40x256xf32, #tpu.memory_space<vmem>>, vector<40x32xf32>
    tpu.vector_store %arg6[%c0_25, %c192], %50 {strides = array<i32>} : memref<40x256xf32, #tpu.memory_space<vmem>>, vector<40x32xf32>,
    %52 = arith.mulf %0, %50 : vector<40x32xf32>
    %c7 = arith.constant 7 : index
    %c0_26 = arith.constant 0 : index
    %c0_27 = arith.constant 0 : index
    %53 = vector.load %arg0[%c7, %c0_26, %c0_27] : memref<8x1x32xf32, #tpu.memory_space<vmem>>, vector<1x1x32xf32>
    %54 = vector.shape_cast %53 : vector<1x1x32xf32> to vector<1x32xf32>
    %55 = vector.broadcast %54 : vector<1x32xf32> to vector<40x32xf32>
    %56 = arith.mulf %1, %55 : vector<40x32xf32>
    %57 = arith.addf %52, %56 : vector<40x32xf32>
    %c0_28 = arith.constant 0 : index
    %c224 = arith.constant 224 : index
    %58 = vector.load %arg6[%c0_28, %c224] : memref<40x256xf32, #tpu.memory_space<vmem>>, vector<40x32xf32>
    tpu.vector_store %arg6[%c0_28, %c224], %57 {strides = array<i32>} : memref<40x256xf32, #tpu.memory_space<vmem>>, vector<40x32xf32>,
    %c0_29 = arith.constant 0 : index
    %c0_30 = arith.constant 0 : index
    %59 = vector.load %arg3[%c0_29, %c0_30] : memref<32x40xf32, #tpu.memory_space<vmem>>, vector<32x40xf32>
    %c0_31 = arith.constant 0 : index
    %c0_32 = arith.constant 0 : index
    %60 = vector.load %arg6[%c0_31, %c0_32] : memref<40x256xf32, #tpu.memory_space<vmem>>, vector<40x256xf32>
    %cst_33 = arith.constant dense<0.000000e+00> : vector<32x256xf32>
    %61 = tpu.matmul %59, %60, %cst_33 {dimension_numbers = #tpu.dot_dimension_numbers<[1], [0], [0], [1], [0, 0, 1, 1], [], []>} : vector<32x40xf32>, vector<40x256xf32>, vector<32x256xf32> -> vector<32x256xf32>
    %c0_34 = arith.constant 0 : index
    %c0_35 = arith.constant 0 : index
    %62 = vector.load %arg4[%c0_34, %c0_35] : memref<32x1xf32, #tpu.memory_space<vmem>>, vector<32x1xf32>
    %63 = vector.broadcast %62 : vector<32x1xf32> to vector<32x256xf32>
    %64 = arith.mulf %61, %63 : vector<32x256xf32>
    %c0_36 = arith.constant 0 : index
    %c0_37 = arith.constant 0 : index
    %65 = vector.load %arg5[%c0_36, %c0_37] : memref<32x256xf32, #tpu.memory_space<vmem>>, vector<32x256xf32>
    tpu.vector_store %arg5[%c0_36, %c0_37], %64 {strides = array<i32>} : memref<32x256xf32, #tpu.memory_space<vmem>>, vector<32x256xf32>,
    return
  }
}

</mosaic_0001>

<bundles_post_ra>
// kernel: tpu_custom_call.1
= control target key start
LH: loop header
LB: loop body
LE: loop exit
PB: predicated region body
PF: predicated region fallthrough
CT: control target
= control target key end

     0   :  { %vm53_vm0 = vcmask 261120   ;;  %s954_s0 = inlined_call_operand.vmem [shape: f32[8,1,32], index: 0, kind: input, shape index: {}]   ;;  %s955_s1 = inlined_call_operand.vmem [shape: f32[40,32], index: 1, kind: input, shape index: {}]   ;;  %s956_s2 = inlined_call_operand.vmem [shape: f32[40,32], index: 2, kind: input, shape index: {}]   ;;  %s957_s3 = inlined_call_operand.vmem [shape: f32[32,40], index: 3, kind: input, shape index: {}]   ;;  %s958_s4 = inlined_call_operand.vmem [shape: f32[32,1], index: 4, kind: input, shape index: {}]   ;;  %s959_s5 = inlined_call_operand.hbm [shape: f32[32,256], index: 5, kind: output, shape index: {}]  }
   0x1   :  { %v658_v0 = vld [vmem:[%s955_s1] sm:$0xff]  ;;  %v683_v7 = vld [vmem:[%s955_s1 + $0x10] sm:$0xff]  ;;  %v700_v14 = vld [vmem:[%s955_s1 + $0x8] sm:$0xff] }
   0x2   :  { %v663_v1 = vld [vmem:[%s955_s1 + $0x20] sm:$0xff]  ;;  %v31_v4 = vmul.f32 0.0, %v658_v0  ;;  %v693_v11 = vld [vmem:[%s956_s2 + $0x10] sm:$0xff]  ;;  %v33_v12 = vmul.f32 0.0, %v683_v7  ;;  %v705_v15 = vld [vmem:[%s956_s2 + $0x8] sm:$0xff]  ;;  %v32_v24 = vmul.f32 0.0, %v700_v14 }
   0x3   :  { %v668_v2 = vld [vmem:[%s956_s2] sm:$0xff]  ;;  %v35_v5 = vmul.f32 0.0, %v663_v1  ;;  %v711_v19 = vld [vmem:[%s955_s1 + $0x18] sm:$0xff] }
   0x4   :  { %v673_v3 = vld [vmem:[%s956_s2 + $0x20] sm:$0xff]  ;;  %v716_v20 = vld [vmem:[%s956_s2 + $0x18] sm:$0xff]  ;;  %v34_v27 = vmul.f32 0.0, %v711_v19 }
   0x5   :  { %v550_v6 = vld [vmem:[%s954_s0] ss:$0 sm:$0xff]  ;;  %v552_v10 = vld [vmem:[%s954_s0 + $0x1] ss:$0 sm:$0xff]  ;;  %v722_v23 = vld [vmem:[%s954_s0 + $0x2] ss:$0 sm:$0xff] }
   0x6   :  { %v43_v8 = vmul.f32 %v550_v6, %v668_v2  ;;  %v47_v9 = vmul.f32 %v550_v6, %v673_v3  ;;  %v45_v13 = vmul.f32 %v550_v6, %v693_v11  ;;  %v72_v18 = vmul.f32 %v552_v10, %v668_v2 }
   0x7   :  { %v74_v22 = vmul.f32 %v552_v10, %v693_v11  ;;  %v44_v25 = vmul.f32 %v550_v6, %v705_v15  ;;  %v46_v28 = vmul.f32 %v550_v6, %v716_v20 }
   0x8   :  { %v48_v16 = vadd.f32 %v43_v8, %v31_v4  ;;  %v52_v17 = vadd.f32 %v47_v9, %v35_v5  ;;  %v50_v21 = vadd.f32 %v45_v13, %v33_v12 }
   0xa   :  { %v59_v26 = vmul.f32 %v48_v16, %v658_v0  ;;  %54 = vst.msk [vmem:[#allocation2] sm:$0xff] %vm53_vm0, %v48_v16  ;;  %58 = vst.msk [vmem:[#allocation2 + $0x40] sm:$0xff] %vm53_vm0, %v52_v17 }
   0xb   :  { %10 = vsyncpa [#allocation4], 0  ;;  %v61_v29 = vmul.f32 %v50_v21, %v683_v7  ;;  %v49_v30 = vadd.f32 %v44_v25, %v32_v24  ;;  %v73_v31 = vmul.f32 %v552_v10, %v705_v15  ;;  %56 = vst.msk [vmem:[#allocation2 + $0x20] sm:$0xff] %vm53_vm0, %v50_v21  ;;  %v51_v33 = vadd.f32 %v46_v28, %v34_v27  ;;  %v556_v38 = vld [vmem:[%s954_s0 + $0x3] ss:$0 sm:$0xff]  ;;  %s617_s19 = smov 32  }
   0xc   :  { %v77_v32 = vadd.f32 %v72_v18, %v59_v26  ;;  %v75_v34 = vmul.f32 %v552_v10, %v716_v20  ;;  %v121_v35 = vmul.f32 %v722_v23, %v668_v2  ;;  %v123_v37 = vmul.f32 %v722_v23, %v693_v11  ;;  %v558_v54 = vld [vmem:[%s954_s0 + $0x4] ss:$0 sm:$0xff]  ;;  %s618_s22 = smov 64   ;;  %v560_v8 = vld [vmem:[%s954_s0 + $0x5] ss:$0 sm:$0xff]  ;;  %s619_s25 = smov 96  }
   0xd   :  { %v79_v36 = vadd.f32 %v74_v22, %v61_v29  ;;  %v60_v39 = vmul.f32 %v49_v30, %v700_v14  ;;  %55 = vst.msk [vmem:[#allocation2 + $0x10] sm:$0xff] %vm53_vm0, %v49_v30  ;;  %v76_v40 = vmul.f32 %v552_v10, %v673_v3  ;;  %v62_v42 = vmul.f32 %v51_v33, %v711_v19  ;;  %s622_s1 = smov [#allocation3]  }
   0xe   :  { %87 = vrot.lane.b32.xlu1 %v77_v32, %s617_s19  ;;  %v108_v41 = vmul.f32 %v77_v32, %v658_v0  ;;  %57 = vst.msk [vmem:[#allocation2 + $0x30] sm:$0xff] %vm53_vm0, %v51_v33  ;;  %v63_v43 = vmul.f32 %v52_v17, %v663_v1  ;;  %v122_v46 = vmul.f32 %v722_v23, %v705_v15  ;;  %vm102_vm1 = vcmask 523520   ;;  %s539_s2 = sshll.u32 %s622_s1, 4  ;;  %s540_s2 = int_to_ptr.vmem [resolvable:$true] %s539_s2 }
   0xf   :  { %91 = vrot.lane.b32.xlu0 %v79_v36, %s617_s19  ;;  %v110_v44 = vmul.f32 %v79_v36, %v683_v7  ;;  %v78_v45 = vadd.f32 %v73_v31, %v60_v39  ;;  %v80_v47 = vadd.f32 %v75_v34, %v62_v42  ;;  %v124_v48 = vmul.f32 %v722_v23, %v716_v20  ;;  %p598_p1 = scmp.lt.s32.totalorder %s540_s2, %s540_s2 }
  0x10   :  { %v126_v49 = vadd.f32 %v121_v35, %v108_v41  ;;  %v170_v50 = vmul.f32 %v556_v38, %v668_v2  ;;  %v172_v51 = vmul.f32 %v556_v38, %v693_v11  ;;  %v767_v57 = vadd.f32 %v76_v40, %v63_v43 }
  0x11   :  { %v758_v52 = vadd.f32 %v123_v37, %v110_v44  ;;  %v109_v53 = vmul.f32 %v78_v45, %v700_v14  ;;  %v111_v55 = vmul.f32 %v80_v47, %v711_v19  ;;  %v171_v60 = vmul.f32 %v556_v38, %v705_v15 }
  0x12   :  { %89 = vrot.lane.b32.xlu1 %v78_v45, %s617_s19  ;;  %v157_v56 = vmul.f32 %v126_v49, %v658_v0  ;;  %v219_v63 = vmul.f32 %v558_v54, %v668_v2  ;;  %v173_v4 = vmul.f32 %v556_v38, %v716_v20  ;;  %v221_v9 = vmul.f32 %v558_v54, %v693_v11 }
  0x13   :  { %v159_v58 = vmul.f32 %v758_v52, %v683_v7  ;;  %136 = vrot.lane.b32.xlu0 %v126_v49, %s618_s22  ;;  %v127_v59 = vadd.f32 %v122_v46, %v109_v53  ;;  %v773_v61 = vadd.f32 %v124_v48, %v111_v55  ;;  %v220_v13 = vmul.f32 %v558_v54, %v705_v15 }
  0x14   :  { %v175_v62 = vadd.f32 %v170_v50, %v157_v56  ;;  %v112_v18 = vmul.f32 %v767_v57, %v663_v1  ;;  %v125_v21 = vmul.f32 %v722_v23, %v673_v3  ;;  %v247_v24 = vmul.f32 %v560_v8, %v668_v2 }
  0x15   :  { %v777_v5 = vadd.f32 %v172_v51, %v159_v58  ;;  %v158_v6 = vmul.f32 %v127_v59, %v700_v14  ;;  %v160_v10 = vmul.f32 %v773_v61, %v711_v19  ;;  %v222_v26 = vmul.f32 %v558_v54, %v716_v20 }
  0x16   :  { %93 = vrot.lane.b32.xlu1 %v80_v47, %s617_s19  ;;  %v206_v12 = vmul.f32 %v175_v62, %v658_v0  ;;  %v801_v29 = vadd.f32 %v125_v21, %v112_v18  ;;  %v174_v30 = vmul.f32 %v556_v38, %v673_v3  ;;  %v248_v33 = vmul.f32 %v560_v8, %v705_v15  ;;  %v562_v38 = vld [vmem:[%s954_s0 + $0x6] ss:$0 sm:$0xff] }
  0x17   :  { %185 = vrot.lane.b32.xlu0 %v175_v62, %s619_s25  ;;  %v176_v16 = vadd.f32 %v171_v60, %v158_v6  ;;  %v208_v17 = vmul.f32 %v777_v5, %v683_v7  ;;  %v797_v25 = vadd.f32 %v173_v4, %v160_v10  ;;  %v250_v37 = vmul.f32 %v560_v8, %v716_v20 }
  0x18   :  { %v224_v22 = vadd.f32 %v219_v63, %v206_v12  ;;  %v161_v34 = vmul.f32 %v801_v29, %v663_v1  ;;  %v223_v41 = vmul.f32 %v558_v54, %v673_v3  ;;  %v249_v44 = vmul.f32 %v560_v8, %v693_v11 }
  0x19   :  { %v207_v27 = vmul.f32 %v176_v16, %v700_v14  ;;  %v226_v28 = vadd.f32 %v221_v9, %v208_v17  ;;  %v209_v23 = vmul.f32 %v797_v25, %v711_v19  ;;  %v296_v46 = vmul.f32 %v562_v38, %v705_v15 }
  0x1a   :  { %138 = vrot.lane.b32.xlu1 %v127_v59, %s618_s22  ;;  %v234_v31 = vmul.f32 %v224_v22, %v658_v0  ;;  %229 = vst.msk [vmem:[#allocation2 + $0x8] sm:$0xff] %vm53_vm0, %v224_v22  ;;  %v818_v40 = vadd.f32 %v174_v30, %v161_v34  ;;  %v295_v49 = vmul.f32 %v562_v38, %v668_v2  ;;  %v564_v59 = vld [vmem:[%s954_s0 + $0x7] ss:$0 sm:$0xff]  ;;  %vm151_vm2 = vcmask 785920  }
  0x1b   :  { %v225_v32 = vadd.f32 %v220_v13, %v207_v27  ;;  %231 = vst.msk [vmem:[#allocation2 + $0x28] sm:$0xff] %vm53_vm0, %v226_v28  ;;  %v227_v36 = vadd.f32 %v222_v26, %v209_v23  ;;  %v236_v43 = vmul.f32 %v226_v28, %v683_v7  ;;  %v298_v51 = vmul.f32 %v562_v38, %v716_v20 }
  0x1c   :  { %v252_v35 = vadd.f32 %v247_v24, %v234_v31  ;;  %v210_v47 = vmul.f32 %v818_v40, %v663_v1  ;;  %v251_v54 = vmul.f32 %v560_v8, %v673_v3  ;;  %v297_v63 = vmul.f32 %v562_v38, %v693_v11 }
  0x1d   :  { %v235_v39 = vmul.f32 %v225_v32, %v700_v14  ;;  %230 = vst.msk [vmem:[#allocation2 + $0x18] sm:$0xff] %vm53_vm0, %v225_v32  ;;  %v237_v42 = vmul.f32 %v227_v36, %v711_v19  ;;  %232 = vst.msk [vmem:[#allocation2 + $0x38] sm:$0xff] %vm53_vm0, %v227_v36  ;;  %v254_v55 = vadd.f32 %v249_v44, %v236_v43  ;;  %vm200_vm3 = vcmask 1048320  }
  0x1e   :  { %187 = vrot.lane.b32.xlu1 %v176_v16, %s619_s25  ;;  %262 = vrot.lane.b32.xlu0 %v252_v35, %s617_s19  ;;  %v228_v53 = vadd.f32 %v223_v41, %v210_v47  ;;  %v282_v56 = vmul.f32 %v252_v35, %v658_v0  ;;  %v344_v6 = vmul.f32 %v564_v59, %v705_v15  ;;  %vm392_vm4 = vcmask 326656  }
  0x1f   :  { %v253_v45 = vadd.f32 %v248_v33, %v235_v39  ;;  %v255_v48 = vadd.f32 %v250_v37, %v237_v42  ;;  %v284_v4 = vmul.f32 %v254_v55, %v683_v7  ;;  %v299_v9 = vmul.f32 %v562_v38, %v673_v3 }
  0x20   :  { %v238_v62 = vmul.f32 %v228_v53, %v663_v1  ;;  %233 = vst.msk [vmem:[#allocation2 + $0x48] sm:$0xff] %vm53_vm0, %v228_v53  ;;  %v300_v10 = vadd.f32 %v295_v49, %v282_v56  ;;  %v343_v17 = vmul.f32 %v564_v59, %v668_v2  ;;  %v347_v21 = vmul.f32 %v564_v59, %v673_v3 }
  0x21   :  { %v283_v50 = vmul.f32 %v253_v45, %v700_v14  ;;  %v285_v58 = vmul.f32 %v255_v48, %v711_v19  ;;  %v302_v15 = vadd.f32 %v297_v63, %v284_v4  ;;  %v346_v3 = vmul.f32 %v564_v59, %v716_v20 }
  0x22   :  { %264 = vrot.lane.b32.xlu0 %v253_v45, %s617_s19  ;;  %268 = vrot.lane.b32.xlu1 %v255_v48, %s617_s19  ;;  %v256_v8 = vadd.f32 %v251_v54, %v238_v62  ;;  %v330_v24 = vmul.f32 %v300_v10, %v658_v0  ;;  %v621_v20 = vmov 0  }
  0x23   :  { %v301_v60 = vadd.f32 %v296_v46, %v283_v50  ;;  %v303_v12 = vadd.f32 %v298_v51, %v285_v58  ;;  %v332_v0 = vmul.f32 %v302_v15, %v683_v7  ;;  %v620_v7 = vmov 0.0   ;;  %592 = vset.pattern.permute.xlu1 %v621_v20  ;;  %591 = vset.pattern.permute.xlu0 %v621_v20 }
  0x24   :  { %v286_v16 = vmul.f32 %v256_v8, %v663_v1  ;;  %469 = vmatprep.mubr.f32.mxu0 %v620_v7  ;;  %481 = vmatprep.mubr.f32.mxu1 %v620_v7 }
  0x25   :  { %v331_v13 = vmul.f32 %v301_v60, %v700_v14  ;;  %v348_v14 = vadd.f32 %v343_v17, %v330_v24  ;;  %v333_v2 = vmul.f32 %v303_v12, %v711_v19  ;;  %v494_v19 = vld [vmem:[%s958_s4] sm:$0xff] }
  0x26   :  { %266 = vrot.lane.b32.xlu0 %v254_v55, %s617_s19  ;;  %312 = vrot.lane.b32.xlu1 %v301_v60, %s618_s22  ;;  %v304_v18 = vadd.f32 %v299_v9, %v286_v16 }
  0x27   :  { %v349_v22 = vadd.f32 %v344_v6, %v331_v13  ;;  %v351_v28 = vadd.f32 %v346_v3, %v333_v2 }
  0x28   :  { %v334_v26 = vmul.f32 %v304_v18, %v663_v1  ;;  %v345_v1 = vmul.f32 %v564_v59, %v693_v11  ;;  %v495_v11 = vld [vmem:[%s958_s4 + $0x8] sm:$0xff] }
  0x2a   :  { %310 = vrot.lane.b32.xlu0 %v300_v10, %s618_s22  ;;  %316 = vrot.lane.b32.xlu1 %v303_v12, %s618_s22  ;;  %v352_v27 = vadd.f32 %v347_v21, %v334_v26  ;;  %v350_v30 = vadd.f32 %v345_v1, %v332_v0  ;;  %v380_v21 = vld [vmem:[%s957_s3 + $0x10] sm:$0xff] }
  0x2e   :  { %314 = vrot.lane.b32.xlu0 %v302_v15, %s618_s22  ;;  %360 = vrot.lane.b32.xlu1 %v349_v22, %s619_s25  ;;  %v379_v15 = vld [vmem:[%s957_s3 + $0x8] sm:$0xff]  ;;  %v381_v22 = vld [vmem:[%s957_s3 + $0x18] sm:$0xff] }
  0x32   :  { %358 = vrot.lane.b32.xlu0 %v348_v14, %s619_s25  ;;  %142 = vrot.lane.b32.xlu1 %v773_v61, %s618_s22 }
  0x36   :  { %140 = vrot.lane.b32.xlu0 %v758_v52, %s618_s22  ;;  %364 = vrot.lane.b32.xlu1 %v351_v28, %s619_s25  ;;  %v496_v52 = vld [vmem:[%s958_s4 + $0x10] sm:$0xff] }
  0x3a   :  { %362 = vrot.lane.b32.xlu0 %v350_v30, %s619_s25  ;;  %191 = vrot.lane.b32.xlu1 %v797_v25, %s619_s25 }
  0x3e   :  { %189 = vrot.lane.b32.xlu0 %v777_v5, %s619_s25  ;;  %95 = vrot.lane.b32.xlu1 %v767_v57, %s617_s19  ;;  %v497_v57 = vld [vmem:[%s958_s4 + $0x18] sm:$0xff] }
  0x42   :  { %270 = vrot.lane.b32.xlu0 %v256_v8, %s617_s19  ;;  %144 = vrot.lane.b32.xlu1 %v801_v29, %s618_s22 }
  0x46   :  { %318 = vrot.lane.b32.xlu0 %v304_v18, %s618_s22  ;;  %193 = vrot.lane.b32.xlu1 %v818_v40, %s619_s25  ;;  %v378_v18 = vld [vmem:[%s957_s3] sm:$0xff]  ;;  %s593_s3 = scalar_lea.vmem %s540_s2, 1024 }
  0x47   :  { %p594_p0 = scmp.ne.s32.totalorder %s540_s2, %s593_s3  ;;  %p599_p2 = scmp.lt.s32.totalorder %s593_s3, %s593_s3 }
  0x49   :  { %p600_p3 = por %p599_p2, %p598_p1 }
  0x4a   :  { %366 = vrot.lane.b32.xlu0 %v352_v27, %s619_s25  ;;  %505 = vperm.xlu1 %592, %v495_v11  }
  0x4b   :  { %p601_p4 = pnand %p600_p3, %p594_p0 }
  0x4e   :  { %500 = vperm.xlu0 %591, %v494_v19   ;;  %510 = vperm.xlu1 %592, %v496_v52  }
  0x52   :  { %515 = vperm.xlu0 %591, %v497_v57  }
  0x80   :  { %v88_v61 = vpop.permute.xlu1 %87 }
  0x81   :  { %103 = vst.msk [vmem:[#allocation2] sm:$0xff] %vm102_vm1, %v88_v61  ;;  %v92_v5 = vpop.permute.xlu0 %91 }
  0x82   :  { %105 = vst.msk [vmem:[#allocation2 + $0x20] sm:$0xff] %vm102_vm1, %v92_v5 }
  0x84   :  { %v90_v25 = vpop.permute.xlu1 %89 }
  0x85   :  { %104 = vst.msk [vmem:[#allocation2 + $0x10] sm:$0xff] %vm102_vm1, %v90_v25  ;;  %v137_v29 = vpop.permute.xlu0 %136 }
  0x86   :  { %152 = vst.msk [vmem:[#allocation2] sm:$0xff] %vm151_vm2, %v137_v29 }
  0x88   :  { %v94_v31 = vpop.permute.xlu1 %93 }
  0x89   :  { %106 = vst.msk [vmem:[#allocation2 + $0x30] sm:$0xff] %vm102_vm1, %v94_v31  ;;  %v186_v23 = vpop.permute.xlu0 %185 }
  0x8a   :  { %201 = vst.msk [vmem:[#allocation2] sm:$0xff] %vm200_vm3, %v186_v23 }
  0x8c   :  { %v139_v32 = vpop.permute.xlu1 %138 }
  0x8d   :  { %153 = vst.msk [vmem:[#allocation2 + $0x10] sm:$0xff] %vm151_vm2, %v139_v32 }
  0x90   :  { %v188_v33 = vpop.permute.xlu1 %187  ;;  %v263_v34 = vpop.permute.xlu0 %262 }
  0x91   :  { %202 = vst.msk [vmem:[#allocation2 + $0x10] sm:$0xff] %vm200_vm3, %v188_v33  ;;  %v382_v54 = vld [vmem:[#allocation2] sm:$0xff] }
  0x92   :  { %277 = vst.msk [vmem:[#allocation2 + $0x8] sm:$0xff] %vm102_vm1, %v263_v34 }
  0x94   :  { %v265_v35 = vpop.permute.xlu0 %264  ;;  %v269_v36 = vpop.permute.xlu1 %268 }
  0x95   :  { %278 = vst.msk [vmem:[#allocation2 + $0x18] sm:$0xff] %vm102_vm1, %v265_v35  ;;  %280 = vst.msk [vmem:[#allocation2 + $0x38] sm:$0xff] %vm102_vm1, %v269_v36 }
  0x98   :  { %v267_v37 = vpop.permute.xlu0 %266  ;;  %v313_v38 = vpop.permute.xlu1 %312  ;;  %v384_v48 = vld [vmem:[#allocation2 + $0x10] sm:$0xff] }
  0x99   :  { %279 = vst.msk [vmem:[#allocation2 + $0x28] sm:$0xff] %vm102_vm1, %v267_v37  ;;  %v571_v55 = vpack.c.bf16 %v384_v48, %v382_v54 }
  0x9a   :  { %326 = vst.msk [vmem:[#allocation2 + $0x18] sm:$0xff] %vm151_vm2, %v313_v38 }
  0x9c   :  { %v311_v39 = vpop.permute.xlu0 %310  ;;  %v317_v40 = vpop.permute.xlu1 %316 }
  0x9d   :  { %325 = vst.msk [vmem:[#allocation2 + $0x8] sm:$0xff] %vm151_vm2, %v311_v39  ;;  %328 = vst.msk [vmem:[#allocation2 + $0x38] sm:$0xff] %vm151_vm2, %v317_v40 }
  0xa0   :  { %v315_v41 = vpop.permute.xlu0 %314  ;;  %v361_v42 = vpop.permute.xlu1 %360 }
  0xa1   :  { %327 = vst.msk [vmem:[#allocation2 + $0x28] sm:$0xff] %vm151_vm2, %v315_v41 }
  0xa2   :  { %374 = vst.msk [vmem:[#allocation2 + $0x18] sm:$0xff] %vm200_vm3, %v361_v42 }
  0xa4   :  { %v359_v43 = vpop.permute.xlu0 %358  ;;  %v143_v44 = vpop.permute.xlu1 %142 }
  0xa5   :  { %373 = vst.msk [vmem:[#allocation2 + $0x8] sm:$0xff] %vm200_vm3, %v359_v43 }
  0xa6   :  { %155 = vst.msk [vmem:[#allocation2 + $0x30] sm:$0xff] %vm151_vm2, %v143_v44 }
  0xa8   :  { %v141_v45 = vpop.permute.xlu0 %140  ;;  %v365_v46 = vpop.permute.xlu1 %364 }
  0xa9   :  { %154 = vst.msk [vmem:[#allocation2 + $0x20] sm:$0xff] %vm151_vm2, %v141_v45  ;;  %v385_v47 = vld [vmem:[#allocation2 + $0x18] sm:$0xff] }
  0xaa   :  { %376 = vst.msk [vmem:[#allocation2 + $0x38] sm:$0xff] %vm200_vm3, %v365_v46 }
  0xac   :  { %v363_v49 = vpop.permute.xlu0 %362  ;;  %v383_v50 = vld [vmem:[#allocation2 + $0x8] sm:$0xff]  ;;  %v192_v51 = vpop.permute.xlu1 %191 }
  0xad   :  { %375 = vst.msk [vmem:[#allocation2 + $0x28] sm:$0xff] %vm200_vm3, %v363_v49  ;;  %v569_v53 = vpack.c.bf16 %v385_v47, %v383_v50  ;;  %204 = vst.msk [vmem:[#allocation2 + $0x30] sm:$0xff] %vm200_vm3, %v192_v51 }
  0xaf   :  { %570 = vmatprep.subr.bf16.mxu0 %v569_v53  ;;  %577 = vmatprep.subr.bf16.mxu1 %v569_v53 }
  0xb0   :  { %v190_v56 = vpop.permute.xlu0 %189  ;;  %572 = vmatpush1.bf16.msra.mxu0 %v571_v55  ;;  %580 = vmatpush1.bf16.msra.mxu1 %v571_v55  ;;  %v96_v58 = vpop.permute.xlu1 %95 }
  0xb1   :  { %203 = vst.msk [vmem:[#allocation2 + $0x20] sm:$0xff] %vm200_vm3, %v190_v56  ;;  %v389_v59 = vld [vmem:[#allocation2 + $0x38] sm:$0xff] }
  0xb2   :  { %107 = vst.msk [vmem:[#allocation2 + $0x40] sm:$0xff] %vm102_vm1, %v96_v58 }
  0xb4   :  { %v271_v60 = vpop.permute.xlu0 %270  ;;  %v387_v62 = vld [vmem:[#allocation2 + $0x28] sm:$0xff]  ;;  %v145_v63 = vpop.permute.xlu1 %144  ;;  %v388_v6 = vld [vmem:[#allocation2 + $0x30] sm:$0xff] }
  0xb5   :  { %281 = vst.msk [vmem:[#allocation2 + $0x48] sm:$0xff] %vm102_vm1, %v271_v60  ;;  %v573_v4 = vpack.c.bf16 %v389_v59, %v387_v62 }
  0xb6   :  { %156 = vst.msk [vmem:[#allocation2 + $0x40] sm:$0xff] %vm151_vm2, %v145_v63 }
  0xb7   :  { %574 = vmatprep.subr.bf16.mxu0 %v573_v4  ;;  %578 = vmatprep.subr.bf16.mxu1 %v573_v4 }
  0xb8   :  { %v319_v8 = vpop.permute.xlu0 %318  ;;  %v386_v9 = vld [vmem:[#allocation2 + $0x20] sm:$0xff]  ;;  %v194_v10 = vpop.permute.xlu1 %193 }
  0xb9   :  { %329 = vst.msk [vmem:[#allocation2 + $0x48] sm:$0xff] %vm151_vm2, %v319_v8  ;;  %v575_v12 = vpack.c.bf16 %v388_v6, %v386_v9 }
  0xba   :  { %205 = vst.msk [vmem:[#allocation2 + $0x40] sm:$0xff] %vm200_vm3, %v194_v10 }
  0xbb   :  { %576 = vmatpush1.bf16.msra.mxu0 %v575_v12  ;;  %581 = vmatpush1.bf16.msra.mxu1 %v575_v12 }
  0xbc   :  { %v367_v13 = vpop.permute.xlu0 %366 }
  0xbd   :  { %377 = vst.msk [vmem:[#allocation2 + $0x48] sm:$0xff] %vm200_vm3, %v367_v13 }
  0xc1   :  { %v390_v16 = vld [vmem:[#allocation2 + $0x40] sm:$0xff] }
  0xc4   :  { %v391_v17 = vld [vmem:[#allocation2 + $0x48] sm:$0xff] }
  0xc5   :  { %413 = vmatprep.subr.mxu0 %v391_v17  ;;  %579 = vmatprep.subr.mxu1 %v391_v17 }
  0xc6   :  { %414 = vmatpush1.msra.mxu0 %v390_v16  ;;  %582 = vmatpush1.msra.mxu1 %v390_v16 }
  0xc7   :  { %565 = vmatmul.mubr.msk.f32.vlgmr.msra.gmra.mrb[0].mxu0 %vm392_vm4, %v378_v18  ;;  %567 = vmatmul.mubr.msk.f32.vlgmr.msra.gmra.mrb[0].mxu1 %vm392_vm4, %v380_v21 }
  0xc8   :  { %475 = vmatprep.mubr.f32.mxu0 %v620_v7  ;;  %487 = vmatprep.mubr.f32.mxu1 %v620_v7 }
  0xc9   :  { %v506_v24 = vpop.permute.xlu1 %505 }
  0xcb   :  { %566 = vmatmul.mubr.msk.f32.gmra.mrb[2].mxu0 %vm392_vm4, %v379_v15  ;;  %568 = vmatmul.mubr.msk.f32.gmra.mrb[2].mxu1 %vm392_vm4, %v381_v22 }
  0xcd   :  { %v501_v26 = vpop.permute.xlu0 %500  ;;  %v511_v27 = vpop.permute.xlu1 %510 }
  0xd1   :  { %v516_v11 = vpop.permute.xlu0 %515 }
 0x19a   :  { %v471_v14 = vpop.f32.mrb[0].mxu0  ;;  %v483_v2 = vpop.f32.mrb[0].mxu1 }
 0x19b   :  { %v518_v3 = vmul.f32 %v501_v26, %v471_v14  ;;  %v522_v28 = vmul.f32 %v511_v27, %v483_v2  ;;  %v473_v0 = vpop.f32.mrb[1].mxu0  ;;  %v485_v1 = vpop.f32.mrb[1].mxu1 }
 0x19c   :  { %v519_v30 = vmul.f32 %v501_v26, %v473_v0  ;;  %v523_v7 = vmul.f32 %v511_v27, %v485_v1 }
 0x19d   :  { %526 = vst [vmem:[#allocation3] sm:$0xff] %v518_v3  ;;  %530 = vst [vmem:[#allocation3 + $0x20] sm:$0xff] %v522_v28 }
 0x19e   :  { %527 = vst [vmem:[#allocation3 + $0x8] sm:$0xff] %v519_v30  ;;  %531 = vst [vmem:[#allocation3 + $0x28] sm:$0xff] %v523_v7  ;;  %v477_v19 = vpop.f32.mrb[2].mxu0  ;;  %v489_v20 = vpop.f32.mrb[2].mxu1 }
 0x19f   :  { %v520_v52 = vmul.f32 %v506_v24, %v477_v19  ;;  %v524_v57 = vmul.f32 %v516_v11, %v489_v20  ;;  %v479_v61 = vpop.f32.mrb[3].mxu0  ;;  %v491_v5 = vpop.f32.mrb[3].mxu1 }
 0x1a0   :  { %v521_v25 = vmul.f32 %v506_v24, %v479_v61  ;;  %v525_v29 = vmul.f32 %v516_v11, %v491_v5 }
 0x1a1   :  { %528 = vst [vmem:[#allocation3 + $0x10] sm:$0xff] %v520_v52  ;;  %532 = vst [vmem:[#allocation3 + $0x30] sm:$0xff] %v524_v57 }
 0x1a2   :  { %529 = vst [vmem:[#allocation3 + $0x18] sm:$0xff] %v521_v25  ;;  %533 = vst [vmem:[#allocation3 + $0x38] sm:$0xff] %v525_v29 }
 0x1a3   :  { %604 = shalt.err (!%p601_p4)
}
 0x1a4   :  { %s605_s21 = scalar_lea.hbm %s959_s5, 1024 }
 0x1a5   :  { %p606_p5 = scmp.ne.s32.totalorder %s959_s5, %s605_s21  ;;  %p609_p6 = scmp.lt.u32.totalorder %s605_s21, %s959_s5 }
 0x1a7   :  { %p611_p7 = pnand %p609_p6, %p606_p5 }
 0x1a9   :  { %614 = shalt.err (!%p611_p7)
}
 0x1aa   :  { %s623_s26 = smov 256   ;;  %s624_s27 = smov 16  }
 0x1ab   :  { %545 = dma.vmem_to_hbm [thread:$0]  %s540_s2, 1024, %s959_s5, [#allocation4], %s623_s26, %s623_s26, %s624_s27  }
 0x1ac   :  { %615 = dma.done.wait [#allocation4], 1024  }
 0x1ad   :  { %616 = vsyncadd [#allocation4], 4294966272 }
 0x1ae   :  { %549 = vsyncpa [#allocation4], 1 }

</bundles_post_ra>
